<compile_context>
chip_gen: v7x
topology: tpu7x:2x2x1
jax: 0.10.0
libtpu: 0.0.40
codegen_flags: <defaults>
</compile_context>

<pallas_src>
import math
from functools import partial

import numpy as np
import jax
import jax.numpy as jnp
from jax.experimental import pallas as pl
from jax.experimental.pallas import tpu as pltpu


# ----------------------------------------------------------------------------
# per-generation tiling constants
# ----------------------------------------------------------------------------
def _select_tiling():
    """(row_tile, col_tile, vmem_limit_bytes) — conservative default fits v7x."""
    row_tile, col_tile, vmem = 256, 512, 48 * 1024 * 1024
    try:
        info = pltpu.get_tpu_info()
        cap = int(getattr(info, "vmem_capacity_bytes", 0) or 0)
        if cap >= 100 * 1024 * 1024:          # v5e / v6e class: 128 MiB VMEM
            row_tile, col_tile, vmem = 512, 1024, 100 * 1024 * 1024
    except Exception:
        pass
    return row_tile, col_tile, vmem


_ROW_TILE, _COL_TILE, _VMEM_LIMIT = _select_tiling()
_TOKEN_PAD = 128                   # token-axis padding for the transformer stacks


def _round_up(x, m):
    return ((x + m - 1) // m) * m


def _tile_rows(n):
    """Padded row count (multiple of the row tile) and the row tile itself.

    Splits single-step grids into >=2 steps when possible so both v7x
    TensorCores get work on the 'parallel' row axis.
    """
    rp = _round_up(n, 8)
    tm = min(_ROW_TILE, rp)
    if tm == rp and rp >= 16 and rp % 16 == 0:
        tm = rp // 2
    rp = _round_up(rp, tm)
    return rp, tm


def _pad_rows(x2d, rp):
    n = x2d.shape[0]
    if rp == n:
        return x2d
    return jnp.pad(x2d, ((0, rp - n), (0, 0)))


def _col_tile(dout):
    if dout <= _COL_TILE:
        return dout
    tn = (_COL_TILE // 128) * 128
    while tn >= 128:
        if dout % tn == 0:
            return tn
        tn -= 128
    # TODO(synk): wide outputs that are not a multiple of 128 fall back to one block
    return dout


# ----------------------------------------------------------------------------
# sin-cos positional embeddings (host-side numpy, deterministic)
# ----------------------------------------------------------------------------
def get_1d_sincos_pos_embed_from_grid(embed_dim, pos):
    assert embed_dim % 2 == 0
    omega = np.arange(embed_dim // 2, dtype=np.float64)
    omega /= embed_dim / 2.0
    omega = 1.0 / 10000 ** omega
    pos = pos.reshape(-1)
    out = np.einsum("m,d->md", pos, omega)
    return np.concatenate([np.sin(out), np.cos(out)], axis=1)


def get_2d_sincos_pos_embed_from_grid(embed_dim, grid):
    assert embed_dim % 2 == 0
    emb_h = get_1d_sincos_pos_embed_from_grid(embed_dim // 2, grid[0])
    emb_w = get_1d_sincos_pos_embed_from_grid(embed_dim // 2, grid[1])
    return np.concatenate([emb_h, emb_w], axis=1)


def get_2d_sincos_pos_embed(embed_dim, grid_size, cls_token=False):
    grid_h = np.arange(grid_size, dtype=np.float32)
    grid_w = np.arange(grid_size, dtype=np.float32)
    grid = np.meshgrid(grid_w, grid_h)
    grid = np.stack(grid, axis=0)
    grid = grid.reshape([2, 1, grid_size, grid_size])
    pos_embed = get_2d_sincos_pos_embed_from_grid(embed_dim, grid)
    if cls_token:
        pos_embed = np.concatenate([np.zeros([1, embed_dim]), pos_embed], axis=0)
    return pos_embed.astype(np.float32)


# ----------------------------------------------------------------------------
# Pallas kernels
# ----------------------------------------------------------------------------
def layernorm_kernel(x_ref, g_ref, b_ref, o_ref, *, eps):
    x = x_ref[...]
    mean = jnp.mean(x, axis=-1, keepdims=True)
    var = jnp.mean(jnp.square(x - mean), axis=-1, keepdims=True)
    xn = (x - mean) * jax.lax.rsqrt(var + eps)
    o_ref[...] = xn * g_ref[...] + b_ref[...]


def ln_linear_kernel(x_ref, g_ref, b_ref, w_ref, bias_ref, o_ref, xn_ref, *,
                     activation, eps):
    """Fused LayerNorm -> Linear (+ optional exact GELU).

    LN is computed once per row tile (column grid axis j == 0) and the
    bf16-normalized tile is stashed in VMEM scratch, then reused for every
    output-column tile.  The matmul runs with bf16 operands, f32 accumulation.
    """
    @pl.when(pl.program_id(1) == 0)
    def _():
        x = x_ref[...]
        mean = jnp.mean(x, axis=-1, keepdims=True)
        var = jnp.mean(jnp.square(x - mean), axis=-1, keepdims=True)
        xn = (x - mean) * jax.lax.rsqrt(var + eps)
        xn_ref[...] = (xn * g_ref[...] + b_ref[...]).astype(jnp.bfloat16)

    y = jnp.dot(xn_ref[...], w_ref[...], preferred_element_type=jnp.float32)
    y = y + bias_ref[...]
    if activation == "gelu":
        # exact (erf-based) GELU matching torch.nn.GELU default
        y = 0.5 * y * (1.0 + jax.lax.erf(y * (1.0 / math.sqrt(2.0))))
    o_ref[...] = y.astype(o_ref.dtype)


def linear_residual_kernel(x_ref, w_ref, bias_ref, res_ref, o_ref):
    """Fused Linear + residual add (res + x @ w + b); bf16 MXU operands."""
    x = x_ref[...]
    if x.dtype != jnp.bfloat16:
        x = x.astype(jnp.bfloat16)
    y = jnp.dot(x, w_ref[...], preferred_element_type=jnp.float32)
    o_ref[...] = (res_ref[...] + y + bias_ref[...]).astype(o_ref.dtype)


def attention_kernel(qkv_ref, w_ref, b_ref, res_ref, o_ref, *,
                     num_heads, hd_pad, scale, n_valid):
    """Fused softmax(QK^T)V + output projection + residual for one batch elem.

    qkv_ref block: [1, Np, 3*H*hd_pad] bf16, columns ordered
      [q_h0 ... q_h{H-1} | k_h0 ... | v_h0 ...] with each head's slice
    zero-padded to hd_pad (multiple of 128) — every slice below is 128-lane
    aligned and the zero pads contribute nothing to any dot product.
    w_ref: [H*hd_pad, D] bf16 proj weight with matching zero-padded rows.
    """
    qkv = qkv_ref[0]                              # [Np, 3*H*hdp] bf16
    n_pad = qkv.shape[0]
    dq = num_heads * hd_pad
    need_mask = n_valid < n_pad
    if need_mask:
        kv_idx = jax.lax.broadcasted_iota(jnp.int32, (n_pad, n_pad), 1)

    acc = res_ref[0] + b_ref[...]                 # residual + proj bias, f32
    for h in range(num_heads):
        lo = h * hd_pad
        q = qkv[:, lo:lo + hd_pad]
        k = qkv[:, dq + lo:dq + lo + hd_pad]
        v = qkv[:, 2 * dq + lo:2 * dq + lo + hd_pad]
        # contract last axes directly (no k.T materialization); f32 scores
        s = jax.lax.dot_general(q, k, (((1,), (1,)), ((), ())),
                                preferred_element_type=jnp.float32) * scale
        if need_mask:
            s = jnp.where(kv_idx < n_valid, s, jnp.float32(-1e30))
        s = s - jnp.max(s, axis=-1, keepdims=True)
        e = jnp.exp(s)
        inv = pl.reciprocal(jnp.sum(e, axis=-1, keepdims=True), approx=True)
        p = (e * inv).astype(jnp.bfloat16)
        oh = jnp.dot(p, v, preferred_element_type=jnp.float32)   # [Np, hdp]
        # fused output projection for this head, accumulated in f32
        acc = acc + jnp.dot(oh.astype(jnp.bfloat16), w_ref[lo:lo + hd_pad, :],
                            preferred_element_type=jnp.float32)
    o_ref[0] = acc.astype(o_ref.dtype)


def loss_kernel(p_ref, t_ref, m_ref, o_ref, acc_num_ref, acc_den_ref):
    """Tiled masked-MSE reduction with persistent VMEM accumulators."""
    i = pl.program_id(0)

    @pl.when(i == 0)
    def _():
        acc_num_ref[...] = jnp.zeros_like(acc_num_ref)
        acc_den_ref[...] = jnp.zeros_like(acc_den_ref)

    d = jnp.square(p_ref[...] - t_ref[...])              # [tm, P]
    per_tok = jnp.mean(d, axis=-1, keepdims=True)        # [tm, 1]
    m = m_ref[...]                                       # [tm, 1]
    acc_num_ref[...] += jnp.sum(per_tok * m, axis=(0, 1), keepdims=True)
    acc_den_ref[...] += jnp.sum(m, axis=(0, 1), keepdims=True)

    @pl.when(i == pl.num_programs(0) - 1)
    def _():
        o_ref[...] = acc_num_ref[...] / acc_den_ref[...]


# ----------------------------------------------------------------------------
# thin wrappers around pallas_call
# ----------------------------------------------------------------------------
def _layernorm(x2d, g, b, eps=1e-5):
    n, d = x2d.shape
    rp, tm = _tile_rows(n)
    xp = _pad_rows(x2d, rp)
    out = pl.pallas_call(
        partial(layernorm_kernel, eps=eps),
        grid=(rp // tm,),
        in_specs=[
            pl.BlockSpec((tm, d), lambda i: (i, 0)),
            pl.BlockSpec((1, d), lambda i: (0, 0)),
            pl.BlockSpec((1, d), lambda i: (0, 0)),
        ],
        out_specs=pl.BlockSpec((tm, d), lambda i: (i, 0)),
        out_shape=jax.ShapeDtypeStruct((rp, d), jnp.float32),
        compiler_params=pltpu.CompilerParams(
            dimension_semantics=("parallel",),
            vmem_limit_bytes=_VMEM_LIMIT),
    )(xp, g.reshape(1, d), b.reshape(1, d))
    return out[:n]


def _fused_ln_linear(x2d, g, b, w, bias, activation=None, eps=1e-5,
                     out_dtype=jnp.float32):
    """LayerNorm + Linear (weights expected in bf16)."""
    n, din = x2d.shape
    dout = w.shape[1]
    rp, tm = _tile_rows(n)
    tn = _col_tile(dout)
    xp = _pad_rows(x2d, rp)
    grid = (rp // tm, dout // tn)
    out = pl.pallas_call(
        partial(ln_linear_kernel, activation=activation, eps=eps),
        grid=grid,
        in_specs=[
            pl.BlockSpec((tm, din), lambda i, j: (i, 0)),
            pl.BlockSpec((1, din), lambda i, j: (0, 0)),
            pl.BlockSpec((1, din), lambda i, j: (0, 0)),
            pl.BlockSpec((din, tn), lambda i, j: (0, j)),
            pl.BlockSpec((1, tn), lambda i, j: (0, j)),
        ],
        out_specs=pl.BlockSpec((tm, tn), lambda i, j: (i, j)),
        out_shape=jax.ShapeDtypeStruct((rp, dout), out_dtype),
        scratch_shapes=[pltpu.VMEM((tm, din), jnp.bfloat16)],
        compiler_params=pltpu.CompilerParams(
            # column axis "arbitrary": the per-row-tile LN scratch is reused
            # sequentially across the column tiles; rows shard across TCs.
            dimension_semantics=("parallel", "arbitrary"),
            vmem_limit_bytes=_VMEM_LIMIT),
    )(xp, g.reshape(1, din), b.reshape(1, din),
      w.astype(jnp.bfloat16), bias.reshape(1, dout))
    return out[:n]


def _linear_residual(x2d, w, bias, res2d):
    """x @ w + b + res; residual buffer aliased to the output."""
    n, din = x2d.shape
    dout = w.shape[1]
    rp, tm = _tile_rows(n)
    tn = _col_tile(dout)
    xp = _pad_rows(x2d, rp)
    resp = _pad_rows(res2d, rp)
    grid = (rp // tm, dout // tn)
    out = pl.pallas_call(
        linear_residual_kernel,
        grid=grid,
        in_specs=[
            pl.BlockSpec((tm, din), lambda i, j: (i, 0)),
            pl.BlockSpec((din, tn), lambda i, j: (0, j)),
            pl.BlockSpec((1, tn), lambda i, j: (0, j)),
            pl.BlockSpec((tm, tn), lambda i, j: (i, j)),
        ],
        out_specs=pl.BlockSpec((tm, tn), lambda i, j: (i, j)),
        out_shape=jax.ShapeDtypeStruct((rp, dout), jnp.float32),
        input_output_aliases={3: 0},
        compiler_params=pltpu.CompilerParams(
            dimension_semantics=("parallel", "parallel"),
            vmem_limit_bytes=_VMEM_LIMIT),
    )(xp, w.astype(jnp.bfloat16), bias.reshape(1, dout), resp)
    return out[:n]


def _attention_proj_residual(qkv3, proj_w, proj_b, x_res, num_heads, hd_pad,
                             scale, n_valid):
    """qkv3: [B, Np, 3*H*hd_pad] bf16; proj_w: [H*hd_pad, D] bf16;
    x_res: [B, Np, D] f32 (residual, aliased to the output)."""
    B, Np, dq3 = qkv3.shape
    D = x_res.shape[-1]
    return pl.pallas_call(
        partial(attention_kernel, num_heads=num_heads, hd_pad=hd_pad,
                scale=scale, n_valid=n_valid),
        grid=(B,),
        in_specs=[
            pl.BlockSpec((1, Np, dq3), lambda bi: (bi, 0, 0)),
            pl.BlockSpec((num_heads * hd_pad, D), lambda bi: (0, 0)),
            pl.BlockSpec((1, D), lambda bi: (0, 0)),
            pl.BlockSpec((1, Np, D), lambda bi: (bi, 0, 0)),
        ],
        out_specs=pl.BlockSpec((1, Np, D), lambda bi: (bi, 0, 0)),
        out_shape=jax.ShapeDtypeStruct((B, Np, D), jnp.float32),
        input_output_aliases={3: 0},
        compiler_params=pltpu.CompilerParams(
            dimension_semantics=("parallel",),
            vmem_limit_bytes=_VMEM_LIMIT),
    )(qkv3, proj_w, proj_b.reshape(1, D), x_res)


def _mae_loss(pred, target, mask):
    B, L, P = pred.shape
    rows = B * L
    p2 = pred.reshape(rows, P)
    t2 = target.reshape(rows, P)
    m2 = mask.reshape(rows, 1)
    rp, tm = _tile_rows(rows)
    if rp != rows:
        # padded rows get mask == 0 so they contribute nothing to num/den
        p2 = _pad_rows(p2, rp)
        t2 = _pad_rows(t2, rp)
        m2 = _pad_rows(m2, rp)
    out = pl.pallas_call(
        loss_kernel,
        grid=(rp // tm,),
        in_specs=[
            pl.BlockSpec((tm, P), lambda i: (i, 0)),
            pl.BlockSpec((tm, P), lambda i: (i, 0)),
            pl.BlockSpec((tm, 1), lambda i: (i, 0)),
        ],
        out_specs=pl.BlockSpec((1, 1), lambda i: (0, 0)),
        out_shape=jax.ShapeDtypeStruct((1, 1), jnp.float32),
        scratch_shapes=[pltpu.VMEM((1, 1), jnp.float32),
                        pltpu.VMEM((1, 1), jnp.float32)],
        compiler_params=pltpu.CompilerParams(
            dimension_semantics=("arbitrary",),
            vmem_limit_bytes=_VMEM_LIMIT),
    )(p2, t2, m2)
    return out[0, 0]


# ----------------------------------------------------------------------------
# head-padded weight layouts (zero pads -> results identical to unpadded math)
# ----------------------------------------------------------------------------
def _pad_qkv_heads(w, b, num_heads, head_dim, hd_pad):
    """[din, 3*H*hd] / [3*H*hd] -> per-head columns zero-padded to hd_pad."""
    if hd_pad == head_dim:
        return w, b
    din = w.shape[0]
    w3 = w.reshape(din, 3, num_heads, head_dim)
    w3 = jnp.pad(w3, ((0, 0), (0, 0), (0, 0), (0, hd_pad - head_dim)))
    b3 = b.reshape(3, num_heads, head_dim)
    b3 = jnp.pad(b3, ((0, 0), (0, 0), (0, hd_pad - head_dim)))
    return w3.reshape(din, 3 * num_heads * hd_pad), b3.reshape(3 * num_heads * hd_pad)


def _pad_proj_heads(w, num_heads, head_dim, hd_pad):
    """[H*hd, dout] -> per-head rows zero-padded to hd_pad."""
    if hd_pad == head_dim:
        return w
    dout = w.shape[1]
    w3 = w.reshape(num_heads, head_dim, dout)
    w3 = jnp.pad(w3, ((0, 0), (0, hd_pad - head_dim), (0, 0)))
    return w3.reshape(num_heads * hd_pad, dout)


# ----------------------------------------------------------------------------
# model (parameter init + forward)
# ----------------------------------------------------------------------------
def _xavier_uniform(key, fan_in, fan_out):
    bound = float(np.sqrt(6.0 / (fan_in + fan_out)))
    return jax.random.uniform(key, (fan_in, fan_out), jnp.float32, -bound, bound)


def _init_block(key, dim, mlp_hidden):
    ks = jax.random.split(key, 4)
    return dict(
        ln1_g=jnp.ones((dim,), jnp.float32),
        ln1_b=jnp.zeros((dim,), jnp.float32),
        qkv_w=_xavier_uniform(ks[0], dim, 3 * dim),
        qkv_b=jnp.zeros((3 * dim,), jnp.float32),
        proj_w=_xavier_uniform(ks[1], dim, dim),
        proj_b=jnp.zeros((dim,), jnp.float32),
        ln2_g=jnp.ones((dim,), jnp.float32),
        ln2_b=jnp.zeros((dim,), jnp.float32),
        fc1_w=_xavier_uniform(ks[2], dim, mlp_hidden),
        fc1_b=jnp.zeros((mlp_hidden,), jnp.float32),
        fc2_w=_xavier_uniform(ks[3], mlp_hidden, dim),
        fc2_b=jnp.zeros((dim,), jnp.float32),
    )


def build_params(key, *, img_size, patch_size, embed_dim, depth, num_heads,
                 dec_dim, dec_depth, dec_heads, mlp_ratio=4.0):
    # the "patch embed" of this module is only a LayerNorm, so the flattened
    # patch length must equal embed_dim
    assert embed_dim == patch_size ** 2, "embed_dim must equal patch_size**2"
    num_patches = (img_size // patch_size) ** 2
    grid_size = int(num_patches ** 0.5)
    ks = jax.random.split(key, 8 + depth + dec_depth)
    enc_hidden = int(embed_dim * mlp_ratio)
    dec_hidden = int(dec_dim * mlp_ratio)

    params = dict(
        num_heads=num_heads,
        dec_num_heads=dec_heads,
        pe_g=jnp.ones((embed_dim,), jnp.float32),
        pe_b=jnp.zeros((embed_dim,), jnp.float32),
        cls_token=0.02 * jax.random.normal(ks[0], (1, 1, embed_dim), jnp.float32),
        pos_embed=jnp.asarray(
            get_2d_sincos_pos_embed(embed_dim, grid_size, cls_token=True)),
        enc_blocks=[_init_block(ks[8 + i], embed_dim, enc_hidden)
                    for i in range(depth)],
        enc_norm_g=jnp.ones((embed_dim,), jnp.float32),
        enc_norm_b=jnp.zeros((embed_dim,), jnp.float32),
        dec_embed_w=_xavier_uniform(ks[1], embed_dim, dec_dim),
        dec_embed_b=jnp.zeros((dec_dim,), jnp.float32),
        mask_token=0.02 * jax.random.normal(ks[2], (1, 1, dec_dim), jnp.float32),
        dec_pos_embed=jnp.asarray(
            get_2d_sincos_pos_embed(dec_dim, grid_size, cls_token=True)),
        dec_blocks=[_init_block(ks[8 + depth + i], dec_dim, dec_hidden)
                    for i in range(dec_depth)],
        dec_norm_g=jnp.ones((dec_dim,), jnp.float32),
        dec_norm_b=jnp.zeros((dec_dim,), jnp.float32),
        pred_w=_xavier_uniform(ks[3], dec_dim, patch_size ** 2),
        pred_b=jnp.zeros((patch_size ** 2,), jnp.float32),
    )
    return params


def transformer_block(x, p, num_heads, n_valid):
    """x: [B, Np, D] with Np padded to a multiple of _TOKEN_PAD; padded key
    positions (>= n_valid) are masked inside attention, padded rows stay
    finite and are discarded by the caller after the stack."""
    B, Np, D = x.shape
    head_dim = D // num_heads
    hd_pad = _round_up(head_dim, 128)
    scale = head_dim ** (-0.5)
    x2d = x.reshape(B * Np, D)

    # fused LN1 + QKV projection with lane-aligned (head-padded) layout,
    # bf16 output feeding straight into the attention kernel
    qkv_w, qkv_b = _pad_qkv_heads(p["qkv_w"], p["qkv_b"], num_heads, head_dim, hd_pad)
    qkv = _fused_ln_linear(x2d, p["ln1_g"], p["ln1_b"], qkv_w, qkv_b,
                           out_dtype=jnp.bfloat16)
    qkv3 = qkv.reshape(B, Np, 3 * num_heads * hd_pad)

    # fused attention + output projection + residual (drop_path(0.0) == identity)
    proj_w = _pad_proj_heads(p["proj_w"], num_heads, head_dim, hd_pad)
    x = _attention_proj_residual(qkv3, proj_w.astype(jnp.bfloat16), p["proj_b"],
                                 x, num_heads, hd_pad, scale, n_valid)
    x2d = x.reshape(B * Np, D)

    # fused LN2 + FC1 + exact GELU, bf16 hidden activations
    h = _fused_ln_linear(x2d, p["ln2_g"], p["ln2_b"], p["fc1_w"], p["fc1_b"],
                         activation="gelu", out_dtype=jnp.bfloat16)

    # fused FC2 + residual add
    x2d = _linear_residual(h, p["fc2_w"], p["fc2_b"], x2d)
    return x2d.reshape(B, Np, D)


def mae_forward(params, x, mask_key, mask_ratio=0.5):
    B, L, ph, pw = x.shape
    D = ph * pw
    assert D == params["pos_embed"].shape[-1], \
        "embed_dim must equal patch_size**2 (patch embed is only a LayerNorm)"
    x_flat = x.reshape(B, L, D).astype(jnp.float32)

    # --- encoder: patch embed (LayerNorm) + pos embed -------------------------
    h = _layernorm(x_flat.reshape(B * L, D), params["pe_g"], params["pe_b"])
    h = h.reshape(B, L, D) + params["pos_embed"][None, 1:, :]

    # --- random masking (glue; RNG/argsort/gather stay in XLA) ----------------
    keep = int(L * (1 - mask_ratio))
    noise = jax.random.uniform(mask_key, (B, L))
    ids_shuffle = jnp.argsort(noise, axis=1)
    ids_restore = jnp.argsort(ids_shuffle, axis=1)
    ids_keep = ids_shuffle[:, :keep]
    x_masked = jnp.take_along_axis(
        h, jnp.broadcast_to(ids_keep[:, :, None], (B, keep, D)), axis=1)
    mask = jnp.ones((B, L), jnp.float32).at[:, :keep].set(0.0)
    mask = jnp.take_along_axis(mask, ids_restore, axis=1)

    # --- cls token + pad tokens ONCE for the whole encoder stack ---------------
    cls = params["cls_token"] + params["pos_embed"][None, :1, :]
    cls = jnp.broadcast_to(cls, (B, 1, D))
    z = jnp.concatenate([cls, x_masked], axis=1)            # [B, n_enc, D]
    n_enc = keep + 1
    np_enc = _round_up(n_enc, _TOKEN_PAD)
    if np_enc != n_enc:
        z = jnp.pad(z, ((0, 0), (0, np_enc - n_enc), (0, 0)))
    for blk in params["enc_blocks"]:
        z = transformer_block(z, blk, params["num_heads"], n_enc)

    # --- fused encoder-norm + decoder embed (run on padded rows, slice after) --
    Dd = params["dec_embed_w"].shape[1]
    zd = _fused_ln_linear(z.reshape(-1, D),
                          params["enc_norm_g"], params["enc_norm_b"],
                          params["dec_embed_w"], params["dec_embed_b"]
                          ).reshape(B, np_enc, Dd)[:, :n_enc, :]

    # --- decoder assembly (gather / mask tokens stay in XLA) -------------------
    n_mask_tok = L + 1 - n_enc
    mask_tokens = jnp.broadcast_to(params["mask_token"], (B, n_mask_tok, Dd))
    z_ = jnp.concatenate([zd[:, 1:, :], mask_tokens], axis=1)
    z_ = jnp.take_along_axis(
        z_, jnp.broadcast_to(ids_restore[:, :, None], (B, L, Dd)), axis=1)
    zd = jnp.concatenate([zd[:, :1, :], z_], axis=1)         # [B, L+1, Dd]
    zd = zd + params["dec_pos_embed"][None, :, :]

    n_dec = L + 1
    np_dec = _round_up(n_dec, _TOKEN_PAD)
    if np_dec != n_dec:
        zd = jnp.pad(zd, ((0, 0), (0, np_dec - n_dec), (0, 0)))
    for blk in params["dec_blocks"]:
        zd = transformer_block(zd, blk, params["dec_num_heads"], n_dec)

    # --- fused decoder-norm + prediction head (padded rows sliced off) ---------
    P = params["pred_w"].shape[1]
    pred = _fused_ln_linear(zd.reshape(-1, Dd),
                            params["dec_norm_g"], params["dec_norm_b"],
                            params["pred_w"], params["pred_b"]
                            ).reshape(B, np_dec, P)[:, 1:n_dec, :]

    # --- masked MSE loss (tiled Pallas reduction; norm_pix_loss=False) ---------
    return _mae_loss(pred, x_flat, mask)


# ----------------------------------------------------------------------------
# main
# ----------------------------------------------------------------------------
if __name__ == "__main__":
    # small config consistent with the module: embed_dim must equal patch_size^2
    IMG, PATCH = 32, 8                 # -> L = (32/8)^2 = 16 patches
    EMBED = PATCH * PATCH              # 64
    DEC = 64
    B = 2
    L = (IMG // PATCH) ** 2

    key = jax.random.PRNGKey(0)
    k_param, k_input, k_mask = jax.random.split(key, 3)

    params = build_params(
        k_param, img_size=IMG, patch_size=PATCH, embed_dim=EMBED,
        depth=1, num_heads=1, dec_dim=DEC, dec_depth=1, dec_heads=1,
        mlp_ratio=4.0)

    # input: pre-patchified single-channel image blocks [B, L, p, p]
    x = jax.random.normal(k_input, (B, L, PATCH, PATCH), jnp.float32)

    loss = mae_forward(params, x, k_mask, mask_ratio=0.5)
    loss = jax.block_until_ready(loss)
    assert jnp.isfinite(loss), "loss is not finite"
    print("KERNEL_OK")
</pallas_src>

<mosaic_0001>
module attributes {stable_mosaic.version = 11 : i64} {
  func.func @layernorm_kernel(%arg0: i32, %arg1: memref<16x64xf32, #tpu.memory_space<vmem>>, %arg2: memref<1x64xf32, #tpu.memory_space<vmem>>, %arg3: memref<1x64xf32, #tpu.memory_space<vmem>>, %arg4: memref<16x64xf32, #tpu.memory_space<vmem>>) attributes {dimension_semantics = [#tpu.dimension_semantics<parallel>], iteration_bounds = array<i64: 2>, scalar_prefetch = 0 : i64, scratch_operands = 0 : i64, tpu.core_type = #tpu.core_type<tc>, window_params = [{transform_indices = @transform_0, window_bounds = array<i64: 16, 64>}, {pipeline_mode = #tpu.pipeline_mode<synchronous>, transform_indices = @transform_1, window_bounds = array<i64: 1, 64>}, {pipeline_mode = #tpu.pipeline_mode<synchronous>, transform_indices = @transform_2, window_bounds = array<i64: 1, 64>}, {transform_indices = @transform_3, window_bounds = array<i64: 16, 64>}]} {
    %c0 = arith.constant 0 : index
    %c0_0 = arith.constant 0 : index
    %0 = vector.load %arg1[%c0, %c0_0] : memref<16x64xf32, #tpu.memory_space<vmem>>, vector<16x64xf32>
    %cst = arith.constant dense<0.000000e+00> : vector<16xf32>
    %1 = vector.multi_reduction <add>, %0, %cst [1] : vector<16x64xf32> to vector<16xf32>
    %2 = vector.shape_cast %1 : vector<16xf32> to vector<16x1xf32>
    %cst_1 = arith.constant 6.400000e+01 : f32
    %3 = vector.broadcast %cst_1 : f32 to vector<16x1xf32>
    %4 = arith.divf %2, %3 : vector<16x1xf32>
    %5 = vector.broadcast %4 : vector<16x1xf32> to vector<16x64xf32>
    %6 = arith.subf %0, %5 : vector<16x64xf32>
    %7 = arith.mulf %6, %6 : vector<16x64xf32>
    %cst_2 = arith.constant dense<0.000000e+00> : vector<16xf32>
    %8 = vector.multi_reduction <add>, %7, %cst_2 [1] : vector<16x64xf32> to vector<16xf32>
    %9 = vector.shape_cast %8 : vector<16xf32> to vector<16x1xf32>
    %cst_3 = arith.constant 6.400000e+01 : f32
    %10 = vector.broadcast %cst_3 : f32 to vector<16x1xf32>
    %11 = arith.divf %9, %10 : vector<16x1xf32>
    %12 = vector.broadcast %4 : vector<16x1xf32> to vector<16x64xf32>
    %13 = arith.subf %0, %12 : vector<16x64xf32>
    %cst_4 = arith.constant 9.99999974E-6 : f32
    %14 = vector.broadcast %cst_4 : f32 to vector<16x1xf32>
    %15 = arith.addf %11, %14 : vector<16x1xf32>
    %16 = math.rsqrt %15 : vector<16x1xf32>
    %17 = vector.broadcast %16 : vector<16x1xf32> to vector<16x64xf32>
    %18 = arith.mulf %13, %17 : vector<16x64xf32>
    %c0_5 = arith.constant 0 : index
    %c0_6 = arith.constant 0 : index
    %19 = vector.load %arg2[%c0_5, %c0_6] : memref<1x64xf32, #tpu.memory_space<vmem>>, vector<1x64xf32>
    %20 = vector.broadcast %19 : vector<1x64xf32> to vector<16x64xf32>
    %21 = arith.mulf %18, %20 : vector<16x64xf32>
    %c0_7 = arith.constant 0 : index
    %c0_8 = arith.constant 0 : index
    %22 = vector.load %arg3[%c0_7, %c0_8] : memref<1x64xf32, #tpu.memory_space<vmem>>, vector<1x64xf32>
    %23 = vector.broadcast %22 : vector<1x64xf32> to vector<16x64xf32>
    %24 = arith.addf %21, %23 : vector<16x64xf32>
    %c0_9 = arith.constant 0 : index
    %c0_10 = arith.constant 0 : index
    %25 = vector.load %arg4[%c0_9, %c0_10] : memref<16x64xf32, #tpu.memory_space<vmem>>, vector<16x64xf32>
    tpu.vector_store %arg4[%c0_9, %c0_10], %24 {strides = array<i32>} : memref<16x64xf32, #tpu.memory_space<vmem>>, vector<16x64xf32>,
    return
  }
  func.func @transform_0(%arg0: i32) -> (i32, i32) {
    %c0_i32 = arith.constant 0 : i32
    %c0_i32_0 = arith.constant 0 : i32
    return %arg0, %c0_i32 : i32, i32
  }
  func.func @transform_1(%arg0: i32) -> (i32, i32) {
    %c0_i32 = arith.constant 0 : i32
    %c0_i32_0 = arith.constant 0 : i32
    %c0_i32_1 = arith.constant 0 : i32
    return %c0_i32, %c0_i32_0 : i32, i32
  }
  func.func @transform_2(%arg0: i32) -> (i32, i32) {
    %c0_i32 = arith.constant 0 : i32
    %c0_i32_0 = arith.constant 0 : i32
    %c0_i32_1 = arith.constant 0 : i32
    return %c0_i32, %c0_i32_0 : i32, i32
  }
  func.func @transform_3(%arg0: i32) -> (i32, i32) {
    %c0_i32 = arith.constant 0 : i32
    %c0_i32_0 = arith.constant 0 : i32
    return %arg0, %c0_i32 : i32, i32
  }
}

</mosaic_0001>

<bundles_post_ra>
// kernel: tpu_custom_call.1
= control target key start
LH: loop header
LB: loop body
LE: loop exit
PB: predicated region body
PF: predicated region fallthrough
CT: control target
= control target key end

     0   :  { %8 = vsyncpa [#allocation3], 0  ;;  %s702_s0 = inlined_call_operand.hbm [shape: f32[32,64], index: 0, kind: input, shape index: {}]   ;;  %s703_s1 = inlined_call_operand.vmem [shape: f32[1,64], index: 1, kind: input, shape index: {}]   ;;  %s704_s2 = inlined_call_operand.vmem [shape: f32[1,64], index: 2, kind: input, shape index: {}]   ;;  %s705_s3 = inlined_call_operand.hbm [shape: f32[32,64], index: 3, kind: output, shape index: {}]  }
   0x1   :  { %10 = vsyncpa [#allocation3 + $0x1], 0 }
   0x2   :  { %11 = vsyncpa [#allocation4], 0 }
   0x3   :  { %13 = vsyncpa [#allocation4 + $0x1], 0  ;;  %s524_s12 = smov 0   ;;  %s526_s13 = smov 0  }
   0x4   :  { %s528_s14 = smov 0   ;;  %s530_s15 = smov 0  }
   0x5 LB: > { %s545_s16 = sadd.s32 4294967295, %s496_s15   ;;  %s328_s17 = sadd.s32 4294967294, %s496_s15   ;;  %s496_s15 = sphi %s530_s15, %s718_s15   ;;  %s492_s14 = sphi %s528_s14, %s717_s14   ;;  %s488_s13 = sphi %s526_s13, %s716_s13   ;;  %s484_s12 = sphi %s524_s12, %s715_s12  }
   0x6   : > { %s549_s18 = sadd.s32 1, %s496_s15   ;;  %s26_s19 = sadd.s32 1, %s492_s14 }
   0x7   : > { %s23_s20 = ssub.s32 %s496_s15, %s549_s18  ;;  %p33_p0 = scmp.ne.s32.totalorder %s492_s14, %s488_s13 }
   0x8   : > { %p24_p1 = scmp.eq.s32.totalorder %s23_s20, 0  ;;  %p34_p2 = scmp.eq.s32.totalorder %s496_s15, 0 }
   0x9   : > { %p39_p3 = scmp.ne.s32.totalorder %s488_s13, %s484_s12  ;;  %p40_p4 = scmp.eq.s32.totalorder %s545_s16, 0 }
   0xa   : > { %s561_s21 = scalar_select %p24_p1, %s492_s14, %s26_s19  }
   0xb   : > { %p563_p5 = por %p34_p2, %p33_p0  ;;  %p567_p6 = por %p40_p4, %p39_p3 }
   0xc   : > { %p105_p7 = scmp.eq.s32.totalorder %s545_s16, 1  ;;  %p111_p8 = scmp.eq.s32.totalorder %s328_s17, 1 }
   0xd   : > { %p358_p10 = scmp.lt.s32.totalorder %s496_s15, 2  ;;  %s137_s26 = sand.u32 1, %s492_s14  }
   0xe   : > { %p574_p11 = por %p105_p7, %p33_p0  ;;  %p578_p12 = por %p111_p8, %p39_p3 }
   0xf   : > { %s344_s27 = sshll.u32 %s496_s15, 8  ;;  %s331_s28 = sshll.u32 %s137_s26, 4 }
  0x10   : > { %s709_s24 = scalar_select %p574_p11, 1, 0 }
  0x11   : > { %s710_s25 = scalar_select %p578_p12, 1, 0 }
  0x12   : > { %s587_s4 = scalar_lea.hbm %s702_s0, %s344_s27  ;;  %s141_s5 = scalar_lea.vmem [#allocation2], %s331_s28 }
  0x13   : > { %s148_s6 = sshll.u32 %s141_s5, 4  ;;  %p591_p13 = pnand %p358_p10, %p563_p5  ;;  %s595_s6 = int_to_ptr.vmem [resolvable:$true] %s148_s6 }
  0x14   : > { %s597_s8 = scalar_lea.sflag [#allocation3], %s137_s26  ;;  %s400_s9 = scalar_lea.hbm %s587_s4, 256 }
  0x15   : > { %p401_p0 = scmp.ne.s32.totalorder %s587_s4, %s400_s9  ;;  %p402_p1 = pneg %p591_p13 }
  0x16   : > { %s405_s17 = scalar_lea.hbm %s702_s0, 512  ;;  %p406_p4 = scmp.lt.u32.totalorder %s587_s4, %s702_s0 }
  0x17   : > { %p403_p2 = pnand %p402_p1, %p401_p0  ;;  %p407_p5 = scmp.lt.u32.totalorder %s405_s17, %s400_s9 }
  0x18   : > { %p409_p8 = scmp.lt.u32.totalorder %s400_s9, %s587_s4 }
  0x19   : > { %p404_p3 = pneg %p403_p2  ;;  %p408_p7 = por %p407_p5, %p406_p4 }
  0x1b   : > { %p410_p10 = por %p409_p8, %p408_p7 }
  0x1d   : > { %p411_p9 = pnand %p410_p10, %p404_p3 }
  0x1f   : > { %414 = shalt.err (!%p411_p9)
}
  0x20   : > { %s415_s22 = scalar_lea.vmem %s595_s6, 256  ;;  %s498_s26 = smov [#allocation2]  }
  0x21   : > { %p416_p0 = scmp.ne.s32.totalorder %s595_s6, %s415_s22  ;;  %s420_s27 = sshll.u32 %s498_s26, 4  ;;  %s421_s27 = int_to_ptr.vmem [resolvable:$false] %s420_s27 }
  0x22   : > { %s422_s28 = scalar_lea.vmem %s421_s27, 512  ;;  %p423_p11 = scmp.lt.s32.totalorder %s595_s6, %s421_s27 }
  0x23   : > { %p418_p2 = pnand %p416_p0, %p402_p1  ;;  %p424_p4 = scmp.lt.s32.totalorder %s422_s28, %s415_s22 }
  0x25   : > { %p419_p12 = pneg %p418_p2  ;;  %p425_p5 = por %p424_p4, %p423_p11 }
  0x27   : > { %p426_p7 = pnand %p425_p5, %p419_p12 }
  0x29   : > { %429 = shalt.err (!%p426_p7)
}
  0x2a   : > { %s499_s29 = smov 128   ;;  %s500_s30 = smov 8  }
  0x2b   : > { %353 = dma.hbm_to_vmem [thread:$0]  (!%p591_p13), %s587_s4, 256, %s595_s6, %s597_s8, %s499_s29, %s499_s29, %s500_s30  }
  0x2c   : > { %p334_p9 = scmp.ge.s32.totalorder %s496_s15, 1  ;;  %p156_p1 = scmp.lt.s32.totalorder %s496_s15, 3 }
  0x2e   : > { %p157_p3 = pnand %p334_p9, %p156_p1 }
  0x2f   : > { %s628_s5 = sand.u32 (!%p157_p3), 1, %s488_s13  }
  0x30   : > { %160 = sbr.rel (%p157_p3) target bundleno = 389 (0x185), region = 32  ;;  %s335_s9 = sshll.u32 (!%p157_p3), %s628_s5, 4 }
  0x31   : > { %s163_s10 = scalar_lea.sflag (!%p157_p3), [#allocation3], %s628_s5  ;;  %s166_s11 = scalar_lea.vmem (!%p157_p3), [#allocation2], %s335_s9 }
  0x37   : > { %475 = dma.done.wait (%p567_p6), %s163_s10, 256  }
  0x38   : > { %477 = vsyncadd (%p567_p6), %s163_s10, 4294967040  ;;  %vm193_vm0 = vcmask 523264   ;;  %v191_v0 = vld [vmem:[%s166_s11] sm:$0xff]  ;;  %v192_v1 = vld [vmem:[%s166_s11 + $0x8] sm:$0xff]  ;;  %s345_s8 = sshll.u32 %s545_s16, 8  ;;  %s188_s17 = scalar_lea.vmem [#allocation5], %s335_s9 }
  0x39   : > { %v194_v2 = vsel %vm193_vm0, %v191_v0, 0.0  ;;  %v197_v3 = vsel %vm193_vm0, %v192_v1, 0.0  ;;  %v337_v21 = vld [vmem:[%s703_s1] ss:$0 sm:$0xff]  ;;  %s255_s19 = sshll.u32 %s188_s17, 4  ;;  %s655_s26 = scalar_lea.hbm %s705_s3, %s345_s8  ;;  %s657_s19 = int_to_ptr.vmem [resolvable:$true] %s255_s19 }
  0x3a   : > { %195 = vadd.xlane.f32.xlu0 %v194_v2  ;;  %v338_v23 = vld [vmem:[%s704_s2] ss:$0 sm:$0xff]  ;;  %s242_s16 = scalar_lea.sflag [#allocation4], %s628_s5  ;;  %s430_s27 = scalar_lea.vmem %s657_s19, 256 }
  0x3b   : > { %p431_p6 = scmp.ne.s32.totalorder %s657_s19, %s430_s27  ;;  %p712_p11 = scmp.ne.s32.totalorder %s709_s24, 0 }
  0x3c   : > { %s501_s28 = smov [#allocation5]  }
  0x3d   : > { %p432_p12 = pnand %p431_p6, %p712_p11  ;;  %s434_s29 = sshll.u32 %s501_s28, 4  ;;  %s435_s29 = int_to_ptr.vmem [resolvable:$false] %s434_s29 }
  0x3e   : > { %198 = vadd.xlane.f32.xlu0 %v197_v3  ;;  %s436_s30 = scalar_lea.vmem %s435_s29, 512  ;;  %p437_p8 = scmp.lt.s32.totalorder %s657_s19, %s435_s29 }
  0x3f   : > { %p433_p13 = pneg %p432_p12  ;;  %p438_p10 = scmp.lt.s32.totalorder %s436_s30, %s430_s27 }
  0x41   : > { %p439_p0 = por %p438_p10, %p437_p8 }
  0x43   : > { %p440_p2 = pnand %p439_p0, %p433_p13 }
  0xc7   : > { %v196_v4 = vpop.xlane.xlu0 %195 }
  0xc8   : > { %v201_v5 = vmul.f32 0.015625, %v196_v4 }
  0xca   : > { %v203_v6 = vsub.f32 %v191_v0, %v201_v5 }
  0xcb   : > { %v199_v7 = vpop.xlane.xlu0 %198 }
  0xcc   : > { %v202_v8 = vmul.f32 0.015625, %v199_v7  ;;  %v205_v9 = vmul.f32 %v203_v6, %v203_v6 }
  0xce   : > { %v204_v10 = vsub.f32 %v192_v1, %v202_v8  ;;  %v207_v11 = vsel %vm193_vm0, %v205_v9, 0.0 }
  0xcf   : > { %208 = vadd.xlane.f32.xlu1 %v207_v11 }
  0xd0   : > { %v206_v12 = vmul.f32 %v204_v10, %v204_v10 }
  0xd2   : > { %v210_v13 = vsel %vm193_vm0, %v206_v12, 0.0 }
  0xd3   : > { %211 = vadd.xlane.f32.xlu1 %v210_v13 }
 0x15c   : > { %v209_v14 = vpop.xlane.xlu1 %208 }
 0x15d   : > { %v213_v15 = vmul.f32 0.015625, %v209_v14 }
 0x15f   : > { %v215_v16 = vadd.f32 1e-05, %v213_v15 }
 0x160   : > { %v212_v17 = vpop.xlane.xlu1 %211 }
 0x161   : > { %396 = vrsqrt.f32 %v215_v16  ;;  %v214_v18 = vmul.f32 0.015625, %v212_v17 }
 0x163   : > { %v216_v19 = vadd.f32 1e-05, %v214_v18 }
 0x165   : > { %398 = vrsqrt.f32 %v216_v19 }
 0x16b   : > { %v397_v20 = vpop.eup %396 }
 0x16c   : > { %v219_v22 = vmul.f32 %v397_v20, %v203_v6 }
 0x16e   : > { %v228_v24 = vmul.f32 %v337_v21, %v219_v22 }
 0x16f   : > { %v399_v25 = vpop.eup %398 }
 0x170   : > { %v237_v26 = vadd.f32 %v338_v23, %v228_v24  ;;  %v220_v27 = vmul.f32 %v399_v25, %v204_v10 }
 0x172   : > { %v229_v28 = vmul.f32 %v337_v21, %v220_v27  ;;  %239 = vst.msk [vmem:[%s188_s17] sm:$0xff] %vm193_vm0, %v237_v26 }
 0x174   : > { %v238_v29 = vadd.f32 %v338_v23, %v229_v28 }
 0x176   : > { %240 = vst.msk [vmem:[%s188_s17 + $0x8] sm:$0xff] %vm193_vm0, %v238_v29 }
 0x177   : > { %443 = shalt.err (!%p440_p2)
}
 0x178   : > { %s444_s9 = scalar_lea.hbm %s655_s26, 256  ;;  %s448_s23 = scalar_lea.hbm %s705_s3, 512 }
 0x179   : > { %p445_p4 = scmp.ne.s32.totalorder %s655_s26, %s444_s9  ;;  %p449_p9 = scmp.lt.u32.totalorder %s655_s26, %s705_s3 }
 0x17a   : > { %p450_p1 = scmp.lt.u32.totalorder %s448_s23, %s444_s9  ;;  %p452_p6 = scmp.lt.u32.totalorder %s444_s9, %s655_s26 }
 0x17b   : > { %p446_p5 = pnand %p445_p4, %p712_p11 }
 0x17c   : > { %p451_p3 = por %p450_p1, %p449_p9 }
 0x17d   : > { %p447_p7 = pneg %p446_p5 }
 0x17e   : > { %p453_p12 = por %p452_p6, %p451_p3 }
 0x180   : > { %p454_p13 = pnand %p453_p12, %p447_p7 }
 0x182   : > { %457 = shalt.err (!%p454_p13)
}
 0x183   : > { %s502_s7 = smov 128   ;;  %s503_s8 = smov 8  }
 0x184   : > { %348 = dma.vmem_to_hbm [thread:$0]  (%p712_p11), %s657_s19, 256, %s655_s26, %s242_s16, %s502_s7, %s502_s7, %s503_s8  }
 0x185 PF: > { %s270_s17 = sand.u32 1, %s484_s12   ;;  %p713_p8 = scmp.ne.s32.totalorder %s710_s25, 0 }
 0x186   : > { %p714_p10 = scmp.ge.s32.totalorder %s496_s15, 2  ;;  %s271_s20 = scalar_lea.sflag [#allocation4], %s270_s17 }
 0x188   : > { %p355_p0 = pnand %p714_p10, %p713_p8 }
 0x18a   : > { %479 = dma.done.wait (!%p355_p0), %s271_s20, 256  }
 0x18b   : > { %481 = vsyncadd (!%p355_p0), %s271_s20, 4294967040  ;;  %p16_p2 = scmp.ge.s32.totalorder %s549_s18, 4   ;;  %s715_s12 = smov %s488_s13 }
 0x18c   : > { %s716_s13 = smov %s492_s14  ;;  %s717_s14 = smov %s561_s21 }
 0x18d   : > { %s718_s15 = smov %s549_s18  ;;  %18 = sbr.rel (!%p16_p2) target bundleno = 5 (0x5), region = 77 }
 0x194   :  { %276 = vsyncpa [#allocation3], 1 }
 0x195   :  { %278 = vsyncpa [#allocation3 + $0x1], 1 }
 0x196   :  { %279 = vsyncpa [#allocation4], 1 }
 0x197   :  { %281 = vsyncpa [#allocation4 + $0x1], 1 }

</bundles_post_ra>
